<compile_context>
chip_gen: v5e
topology: v5e:2x2
jax: 0.10.0
libtpu: 0.0.40
codegen_flags: <defaults>
</compile_context>

<pallas_src>
import jax
import jax.numpy as jnp
from jax.experimental import pallas as pl
from jax.experimental.pallas import tpu as pltpu


def _bg_former_kernel(bgc_ref, img_ref, out_ref):
    """Processes one (C, TILE) flattened-spatial tile of one image.

    bgc_ref : SMEM (N*C,) float32 — per-image, per-channel background color.
    img_ref : VMEM (C, TILE)      — image tile (flattened spatial last dim).
    out_ref : VMEM (C, TILE)
    """
    n = pl.program_id(0)
    C = img_ref.shape[0]

    # Background mask from channel 0 only (matches PyTorch reference).
    maskf = (img_ref[0:1, :] == 0).astype(jnp.float32)        # (1, TILE)

    # Unrolled per-channel scalar FMA; bgc scalars come straight from SMEM.
    for c in range(C):
        row = img_ref[c:c + 1, :].astype(jnp.float32)          # (1, TILE)
        out_ref[c:c + 1, :] = (row + maskf * bgc_ref[n * C + c]).astype(out_ref.dtype)


def _pick_spatial_tile(hw, c, itemsize, target_block_bytes=6 * 1024 * 1024):
    """Lane-dense (multiple-of-128) spatial tile, ~target_block_bytes per
    (C, TILE) block.  Prefers a tile that divides hw exactly (unmasked stores);
    otherwise returns a bounded 128-aligned tile for a ceil-div grid with a
    masked tail block.  Small extents fall back to the full dimension (always a
    legal block shape)."""
    if hw <= 128:
        return hw
    max_lanes = max(128, (target_block_bytes // max(1, c * itemsize)) // 128 * 128)
    if hw % 128 == 0:
        tile = min(hw, max_lanes)
        tile = (tile // 128) * 128
        while tile >= 128 and hw % tile != 0:
            tile -= 128
        return tile if tile >= 128 else hw
    # hw not 128-aligned: bounded tile + ceil-div grid (tail block is masked).
    tile = min(max_lanes, ((hw + 127) // 128) * 128)
    return hw if tile >= hw else tile


def bg_former(img, mask, bg_color):
    """img: (N, C, H, W); mask: unused by the reference module;
    bg_color: (N, C, 1, 1) or broadcastable to it."""
    del mask  # unused by the reference module
    N, C, H, W = img.shape
    HW = H * W

    # Free, contiguous reshape for NCHW: lane-dense last dim = flattened spatial.
    img_flat = img.reshape(N, C, HW)
    # Per-(image, channel) scalars as a flat 1D table -> tiny SMEM footprint.
    bgc = jnp.broadcast_to(bg_color, (N, C, 1, 1)).reshape(N * C).astype(jnp.float32)

    tile = _pick_spatial_tile(HW, C, img.dtype.itemsize)
    grid = (N, pl.cdiv(HW, tile))

    out_flat = pl.pallas_call(
        _bg_former_kernel,
        out_shape=jax.ShapeDtypeStruct((N, C, HW), img.dtype),
        grid_spec=pltpu.PrefetchScalarGridSpec(
            num_scalar_prefetch=0,
            grid=grid,
            in_specs=[
                # Whole (N*C,) color table, resident in SMEM (no per-step DMA).
                pl.BlockSpec(memory_space=pltpu.MemorySpace.SMEM),
                # Lane-dense image tile; batch dim squeezed -> 2D kernel Ref.
                pl.BlockSpec((pl.Squeezed(), C, tile), lambda n, t: (n, 0, t)),
            ],
            out_specs=pl.BlockSpec((pl.Squeezed(), C, tile), lambda n, t: (n, 0, t)),
        ),
        compiler_params=pltpu.CompilerParams(
            dimension_semantics=("parallel", "parallel"),
            vmem_limit_bytes=48 << 20,
        ),
    )(bgc, img_flat)

    return out_flat.reshape(N, C, H, W)


def _reference(img, mask, bg_color):
    """Pure-JAX reference mirroring the PyTorch forward."""
    zeros = jnp.zeros_like(img)
    bg_where = jnp.where(img == zeros, 1.0, 0.0)
    bg_where = bg_where[:, 0, :, :][:, None, :, :]
    bg = bg_where * bg_color
    return bg + img


if __name__ == "__main__":
    key = jax.random.PRNGKey(0)
    k_img, k_mask, k_bg = jax.random.split(key, 3)

    N, C, H, W = 2, 4, 16, 16
    img = jax.random.normal(k_img, (N, C, H, W), dtype=jnp.float32)
    # Introduce exact zeros so the bg_where branch is exercised.
    zero_mask = jax.random.bernoulli(k_mask, p=0.3, shape=(N, 1, H, W))
    img = img * (1.0 - zero_mask.astype(jnp.float32))
    mask = jax.random.bernoulli(k_mask, p=0.5, shape=(N, 1, H, W)).astype(jnp.float32)
    bg_color = jax.random.uniform(k_bg, (N, C, 1, 1), dtype=jnp.float32)

    out = bg_former(img, mask, bg_color)
    out = jax.block_until_ready(out)

    ref = _reference(img, mask, bg_color)
    assert out.shape == ref.shape, (out.shape, ref.shape)
    assert jnp.allclose(out, ref, atol=1e-6), float(jnp.max(jnp.abs(out - ref)))

    print("KERNEL_OK")
</pallas_src>

<mosaic_0001>
module attributes {stable_mosaic.version = 11 : i64} {
  func.func @_bg_former_kernel(%arg0: i32, %arg1: i32, %arg2: memref<8xf32, #tpu.memory_space<smem>>, %arg3: memref<1x4x256xf32, #tpu.memory_space<vmem>>, %arg4: memref<1x4x256xf32, #tpu.memory_space<vmem>>) attributes {dimension_semantics = [#tpu.dimension_semantics<parallel>, #tpu.dimension_semantics<parallel>], iteration_bounds = array<i64: 2, 1>, scalar_prefetch = 0 : i64, scratch_operands = 0 : i64, tpu.core_type = #tpu.core_type<tc>, window_params = [{transform_indices = @transform_0, window_bounds = array<i64: 8>}, {transform_indices = @transform_1, window_bounds = array<i64: 1, 4, 256>}, {transform_indices = @transform_2, window_bounds = array<i64: 1, 4, 256>}]} {
    %c0 = arith.constant 0 : index
    %c0_0 = arith.constant 0 : index
    %c0_1 = arith.constant 0 : index
    %0 = vector.load %arg3[%c0, %c0_0, %c0_1] : memref<1x4x256xf32, #tpu.memory_space<vmem>>, vector<1x1x256xf32>
    %1 = vector.shape_cast %0 : vector<1x1x256xf32> to vector<1x256xf32>
    %cst = arith.constant 0.000000e+00 : f32
    %2 = vector.broadcast %cst : f32 to vector<1x256xf32>
    %3 = arith.cmpf oeq, %1, %2 : vector<1x256xf32>
    %4 = arith.extui %3 : vector<1x256xi1> to vector<1x256xi32>
    %5 = arith.sitofp %4 : vector<1x256xi32> to vector<1x256xf32>
    %c0_2 = arith.constant 0 : index
    %c0_3 = arith.constant 0 : index
    %c0_4 = arith.constant 0 : index
    %6 = vector.load %arg3[%c0_2, %c0_3, %c0_4] : memref<1x4x256xf32, #tpu.memory_space<vmem>>, vector<1x1x256xf32>
    %7 = vector.shape_cast %6 : vector<1x1x256xf32> to vector<1x256xf32>
    %c4_i32 = arith.constant 4 : i32
    %8 = arith.muli %arg0, %c4_i32 : i32
    %c0_i32 = arith.constant 0 : i32
    %9 = arith.addi %8, %c0_i32 : i32
    %10 = arith.index_cast %9 : i32 to index
    %11 = memref.load %arg2[%10] : memref<8xf32, #tpu.memory_space<smem>>
    %12 = vector.broadcast %11 : f32 to vector<1x256xf32>
    %13 = arith.mulf %5, %12 : vector<1x256xf32>
    %14 = arith.addf %7, %13 : vector<1x256xf32>
    %c0_5 = arith.constant 0 : index
    %c0_6 = arith.constant 0 : index
    %c0_7 = arith.constant 0 : index
    %15 = vector.load %arg4[%c0_5, %c0_6, %c0_7] : memref<1x4x256xf32, #tpu.memory_space<vmem>>, vector<1x1x256xf32>
    %16 = vector.shape_cast %15 : vector<1x1x256xf32> to vector<1x256xf32>
    %17 = vector.shape_cast %14 : vector<1x256xf32> to vector<1x1x256xf32>
    tpu.vector_store %arg4[%c0_5, %c0_6, %c0_7], %17 {strides = array<i32>} : memref<1x4x256xf32, #tpu.memory_space<vmem>>, vector<1x1x256xf32>,
    %c0_8 = arith.constant 0 : index
    %c1 = arith.constant 1 : index
    %c0_9 = arith.constant 0 : index
    %18 = vector.load %arg3[%c0_8, %c1, %c0_9] : memref<1x4x256xf32, #tpu.memory_space<vmem>>, vector<1x1x256xf32>
    %19 = vector.shape_cast %18 : vector<1x1x256xf32> to vector<1x256xf32>
    %c4_i32_10 = arith.constant 4 : i32
    %20 = arith.muli %arg0, %c4_i32_10 : i32
    %c1_i32 = arith.constant 1 : i32
    %21 = arith.addi %20, %c1_i32 : i32
    %22 = arith.index_cast %21 : i32 to index
    %23 = memref.load %arg2[%22] : memref<8xf32, #tpu.memory_space<smem>>
    %24 = vector.broadcast %23 : f32 to vector<1x256xf32>
    %25 = arith.mulf %5, %24 : vector<1x256xf32>
    %26 = arith.addf %19, %25 : vector<1x256xf32>
    %c0_11 = arith.constant 0 : index
    %c1_12 = arith.constant 1 : index
    %c0_13 = arith.constant 0 : index
    %27 = vector.load %arg4[%c0_11, %c1_12, %c0_13] : memref<1x4x256xf32, #tpu.memory_space<vmem>>, vector<1x1x256xf32>
    %28 = vector.shape_cast %27 : vector<1x1x256xf32> to vector<1x256xf32>
    %29 = vector.shape_cast %26 : vector<1x256xf32> to vector<1x1x256xf32>
    tpu.vector_store %arg4[%c0_11, %c1_12, %c0_13], %29 {strides = array<i32>} : memref<1x4x256xf32, #tpu.memory_space<vmem>>, vector<1x1x256xf32>,
    %c0_14 = arith.constant 0 : index
    %c2 = arith.constant 2 : index
    %c0_15 = arith.constant 0 : index
    %30 = vector.load %arg3[%c0_14, %c2, %c0_15] : memref<1x4x256xf32, #tpu.memory_space<vmem>>, vector<1x1x256xf32>
    %31 = vector.shape_cast %30 : vector<1x1x256xf32> to vector<1x256xf32>
    %c4_i32_16 = arith.constant 4 : i32
    %32 = arith.muli %arg0, %c4_i32_16 : i32
    %c2_i32 = arith.constant 2 : i32
    %33 = arith.addi %32, %c2_i32 : i32
    %34 = arith.index_cast %33 : i32 to index
    %35 = memref.load %arg2[%34] : memref<8xf32, #tpu.memory_space<smem>>
    %36 = vector.broadcast %35 : f32 to vector<1x256xf32>
    %37 = arith.mulf %5, %36 : vector<1x256xf32>
    %38 = arith.addf %31, %37 : vector<1x256xf32>
    %c0_17 = arith.constant 0 : index
    %c2_18 = arith.constant 2 : index
    %c0_19 = arith.constant 0 : index
    %39 = vector.load %arg4[%c0_17, %c2_18, %c0_19] : memref<1x4x256xf32, #tpu.memory_space<vmem>>, vector<1x1x256xf32>
    %40 = vector.shape_cast %39 : vector<1x1x256xf32> to vector<1x256xf32>
    %41 = vector.shape_cast %38 : vector<1x256xf32> to vector<1x1x256xf32>
    tpu.vector_store %arg4[%c0_17, %c2_18, %c0_19], %41 {strides = array<i32>} : memref<1x4x256xf32, #tpu.memory_space<vmem>>, vector<1x1x256xf32>,
    %c0_20 = arith.constant 0 : index
    %c3 = arith.constant 3 : index
    %c0_21 = arith.constant 0 : index
    %42 = vector.load %arg3[%c0_20, %c3, %c0_21] : memref<1x4x256xf32, #tpu.memory_space<vmem>>, vector<1x1x256xf32>
    %43 = vector.shape_cast %42 : vector<1x1x256xf32> to vector<1x256xf32>
    %c4_i32_22 = arith.constant 4 : i32
    %44 = arith.muli %arg0, %c4_i32_22 : i32
    %c3_i32 = arith.constant 3 : i32
    %45 = arith.addi %44, %c3_i32 : i32
    %46 = arith.index_cast %45 : i32 to index
    %47 = memref.load %arg2[%46] : memref<8xf32, #tpu.memory_space<smem>>
    %48 = vector.broadcast %47 : f32 to vector<1x256xf32>
    %49 = arith.mulf %5, %48 : vector<1x256xf32>
    %50 = arith.addf %43, %49 : vector<1x256xf32>
    %c0_23 = arith.constant 0 : index
    %c3_24 = arith.constant 3 : index
    %c0_25 = arith.constant 0 : index
    %51 = vector.load %arg4[%c0_23, %c3_24, %c0_25] : memref<1x4x256xf32, #tpu.memory_space<vmem>>, vector<1x1x256xf32>
    %52 = vector.shape_cast %51 : vector<1x1x256xf32> to vector<1x256xf32>
    %53 = vector.shape_cast %50 : vector<1x256xf32> to vector<1x1x256xf32>
    tpu.vector_store %arg4[%c0_23, %c3_24, %c0_25], %53 {strides = array<i32>} : memref<1x4x256xf32, #tpu.memory_space<vmem>>, vector<1x1x256xf32>,
    return
  }
  func.func @transform_0(%arg0: i32, %arg1: i32) -> i32 {
    %c0_i32 = arith.constant 0 : i32
    %c0_i32_0 = arith.constant 0 : i32
    return %c0_i32 : i32
  }
  func.func @transform_1(%arg0: i32, %arg1: i32) -> (i32, i32, i32) {
    %c0_i32 = arith.constant 0 : i32
    %c0_i32_0 = arith.constant 0 : i32
    return %arg0, %c0_i32, %arg1 : i32, i32, i32
  }
  func.func @transform_2(%arg0: i32, %arg1: i32) -> (i32, i32, i32) {
    %c0_i32 = arith.constant 0 : i32
    %c0_i32_0 = arith.constant 0 : i32
    return %arg0, %c0_i32, %arg1 : i32, i32, i32
  }
}

</mosaic_0001>

<bundles_post_ra>
// kernel: tpu_custom_call.1
= control target key start
LH: loop header
LB: loop body
LE: loop exit
PB: predicated region body
PF: predicated region fallthrough
CT: control target
= control target key end

     0   :  { %7 = vsyncpa [#allocation5], 0  ;;  %s765_s0 = inlined_call_operand.hbm [shape: f32[8], index: 0, kind: input, shape index: {}]   ;;  %s766_s1 = inlined_call_operand.hbm [shape: f32[2,4,256], index: 1, kind: input, shape index: {}]   ;;  %s767_s2 = inlined_call_operand.hbm [shape: f32[2,4,256], index: 2, kind: output, shape index: {}]  }
   0x1   :  { %8 = vsyncpa [#allocation3], 0 }
   0x2   :  { %10 = vsyncpa [#allocation3 + $0x1], 0 }
   0x3   :  { %11 = vsyncpa [#allocation4], 0 }
   0x4   :  { %13 = vsyncpa [#allocation4 + $0x1], 0  ;;  %s603_s9 = smov 0   ;;  %s605_s10 = smov 0  }
   0x5   :  { %s607_s11 = smov 0   ;;  %s609_s12 = smov 0  }
   0x6   :  { %s611_s13 = smov 0   ;;  %s613_s14 = smov 0  }
   0x7 LB: > { %s352_s15 = sadd.s32 4294967295, %s584_s14   ;;  %s353_s16 = sadd.s32 4294967294, %s584_s14   ;;  %s584_s14 = sphi %s613_s14, %s19_s14   ;;  %s580_s13 = sphi %s611_s13, %s781_s13   ;;  %s576_s12 = sphi %s609_s12, %s780_s12   ;;  %s572_s11 = sphi %s607_s11, %s779_s11   ;;  %s568_s10 = sphi %s605_s10, %s778_s10   ;;  %s564_s9 = sphi %s603_s9, %s777_s9  }
   0x8   : > { %p74_p0 = scmp.ne.s32.totalorder %s568_s10, %s564_s9  ;;  %p637_p1 = scmp.eq.s32.totalorder %s352_s15, 0 }
   0x9   : > { %p641_p2 = scmp.eq.s32.totalorder %s352_s15, 1  ;;  %p106_p3 = scmp.eq.s32.totalorder %s353_s16, 1 }
   0xa   : > { %p647_p4 = por %p637_p1, %p74_p0  ;;  %p354_p5 = scmp.ge.s32.totalorder %s584_s14, 1 }
   0xb   : > { %p652_p6 = por %p106_p3, %p74_p0  ;;  %p113_p7 = scmp.lt.s32.totalorder %s584_s14, 3 }
   0xc   : > { %s125_s23 = sshll.u32 %s765_s0, 4  ;;  %s31_s25 = sadd.s32 1, %s580_s13  ;;  %s126_s23 = int_to_ptr.hbm [resolvable:$true] %s125_s23 }
   0xd   : > { %p660_p8 = pnand %p354_p5, %p113_p7  ;;  %s61_s26 = sadd.s32 1, %s572_s11 }
   0xe   : > { %p33_p12 = scmp.ge.s32.totalorder %s31_s25, 2  ;;  %s586_s27 = smov [#allocation2]  }
   0xf   : > { %p387_p10 = pneg %p660_p8  ;;  %p68_p13 = scmp.ne.s32.totalorder %s572_s11, %s568_s10 }
  0x10   : > { %s783_s25 = smov (%p33_p12, %s31_s25), 0  ;;  %p69_p0 = scmp.eq.s32.totalorder %s584_s14, 0 }
  0x11   : > { %p388_p11 = pnand %p387_p10, %p637_p1  ;;  %s56_s28 = ssub.s32 %s580_s13, %s783_s25 }
  0x12   : > { %p400_p3 = scmp.lt.s32.totalorder %s584_s14, 2  ;;  %p59_p5 = scmp.eq.s32.totalorder %s56_s28, 0 }
  0x13   : > { %390 = dma.hbm_to_smem (!%p388_p11), %s126_s23, 16, %s586_s27, [#allocation5]  }
  0x14   : > { %p70_p7 = por %p69_p0, %p68_p13  ;;  %p681_p9 = por %p641_p2, %p68_p13 }
  0x15   : > { %s136_s30 = sand.u32 1, %s572_s11   ;;  %s377_s5 = sshll.u32 %s580_s13, 3 }
  0x16   : > { %s687_s3 = scalar_select %p59_p5, %s572_s11, %s61_s26  }
  0x17   : > { %s357_s4 = sshll.u32 %s136_s30, 3  ;;  %s147_s8 = scalar_lea.hbm %s766_s1, %s377_s5 }
  0x18   : > { %s140_s15 = scalar_lea.vmem [#allocation6], %s357_s4  ;;  %s149_s21 = sshll.u32 %s147_s8, 4  ;;  %s150_s21 = int_to_ptr.hbm [resolvable:$true] %s149_s21 }
  0x19   : > { %s151_s16 = sshll.u32 %s140_s15, 4  ;;  %p392_p10 = pnand %p400_p3, %p70_p7  ;;  %s152_s16 = int_to_ptr.vmem [resolvable:$true] %s151_s16 }
  0x1a   : > { %s137_s18 = scalar_lea.sflag [#allocation3], %s136_s30  ;;  %160 = sbr.rel (%p660_p8) target bundleno = 57 (0x39), region = 28 }
  0x1b   : > { %394 = dma.hbm_to_vmem [thread:$0]  (!%p392_p10), %s150_s21, 128, %s152_s16, %s137_s18  }
  0x1f   : > { %551 = dma.done.wait (%p637_p1), [#allocation5], 16  }
  0x20   : > { %553 = vsyncadd (%p637_p1), [#allocation5], 4294967280  ;;  %s702_s22 = sand.u32 1, %s568_s10  }
  0x21   : > { %s362_s23 = sshll.u32 %s702_s22, 3  ;;  %s168_s26 = scalar_lea.sflag [#allocation3], %s702_s22 }
  0x22   : > { %s171_s27 = scalar_lea.vmem [#allocation6], %s362_s23 }
  0x23   : > { %555 = dma.done.wait (%p647_p4), %s168_s26, 128  }
  0x24   : > { %557 = vsyncadd (%p647_p4), %s168_s26, 4294967168 }
  0x25   : > { %177 = sfence }
  0x26   : > { %v196_v0 = vld [vmem:[%s171_s27] ss:$4 sm:$0x3]  ;;  %s365_s17 = sshll.u32 %s576_s12, 2  ;;  %v587_v1 = vmov 0.0   ;;  %v205_v3 = vlaneseq  ;;  %s378_s8 = sshll.u32 %s576_s12, 3 }
  0x27   : > { %s201_s24 = sld [smem:[#allocation2 + %s365_s17]]  ;;  %s212_s28 = sadd.s32 1, %s365_s17  ;;  %vm197_vm0 = vcmp.eq.f32.partialorder %v196_v0, 0.0  ;;  %v366_v6 = vld [vmem:[%s171_s27 + $0x1] ss:$4 sm:$0x3] }
  0x28   : > { %s213_s30 = sld [smem:[#allocation2 + %s212_s28]]  ;;  %s221_s4 = sadd.s32 2, %s365_s17  ;;  %v364_v2 = vsel %vm197_vm0, 1.0, %v587_v1  ;;  %vm717_vm1 = vcmp.lt.s32.totalorder %v205_v3, 256 }
  0x29   : > { %s230_s5 = sadd.s32 3, %s365_s17  ;;  %s222_s6 = sld [smem:[#allocation2 + %s221_s4]]  ;;  %v368_v11 = vld [vmem:[%s171_s27 + $0x2] ss:$4 sm:$0x3] }
  0x2a   : > { %s231_s7 = sld [smem:[#allocation2 + %s230_s5]]  ;;  %s251_s16 = scalar_lea.hbm %s767_s2, %s378_s8  ;;  %v370_v15 = vld [vmem:[%s171_s27 + $0x3] ss:$4 sm:$0x3] }
  0x2b   : > { %s193_s12 = scalar_lea.vmem [#allocation7], %s362_s23  ;;  %s255_s18 = sshll.u32 %s251_s16, 4  ;;  %s256_s18 = int_to_ptr.hbm [resolvable:$true] %s255_s18 }
  0x2c   : > { %s253_s21 = sshll.u32 %s193_s12, 4  ;;  %s238_s23 = scalar_lea.sflag [#allocation4], %s702_s22  ;;  %s254_s21 = int_to_ptr.vmem [resolvable:$true] %s253_s21 }
  0x2d   : > { %v202_v4 = vstv %s201_s24  ;;  %s512_s26 = sshra.s32 %s256_s18, 4  ;;  %s518_s28 = scalar_lea.hbm %s767_s2, 16  ;;  %s513_s26 = int_to_ptr.hbm [resolvable:$true] %s512_s26 }
  0x2e   : > { %v203_v5 = vmul.f32 %v364_v2, %v202_v4  ;;  %v214_v7 = vstv %s213_s30  ;;  %s514_s27 = scalar_lea.hbm %s513_s26, 8  ;;  %p519_p8 = scmp.lt.s32.totalorder %s513_s26, %s767_s2 }
  0x2f   : > { %v215_v9 = vmul.f32 %v364_v2, %v214_v7  ;;  %v223_v12 = vstv %s222_s6  ;;  %p515_p1 = scmp.ne.s32.totalorder %s513_s26, %s514_s27  ;;  %p520_p11 = scmp.lt.s32.totalorder %s518_s28, %s514_s27 }
  0x30   : > { %v204_v10 = vadd.f32 %v203_v5, %v196_v0  ;;  %v224_v14 = vmul.f32 %v364_v2, %v223_v12  ;;  %v232_v16 = vstv %s231_s7 }
  0x31   : > { %v216_v13 = vadd.f32 %v366_v6, %v215_v9  ;;  %v233_v17 = vmul.f32 %v364_v2, %v232_v16  ;;  %p516_p2 = pnand %p515_p1, %p681_p9  ;;  %p521_p12 = por %p520_p11, %p519_p8 }
  0x32   : > { %209 = vst.msk [vmem:[%s193_s12] ss:$4 sm:$0x3] %vm717_vm1, %v204_v10  ;;  %v225_v18 = vadd.f32 %v368_v11, %v224_v14 }
  0x33   : > { %367 = vst.msk [vmem:[%s193_s12 + $0x1] ss:$4 sm:$0x3] %vm717_vm1, %v216_v13  ;;  %v234_v19 = vadd.f32 %v370_v15, %v233_v17  ;;  %p517_p4 = pneg %p516_p2 }
  0x34   : > { %369 = vst.msk [vmem:[%s193_s12 + $0x2] ss:$4 sm:$0x3] %vm717_vm1, %v225_v18 }
  0x35   : > { %371 = vst.msk [vmem:[%s193_s12 + $0x3] ss:$4 sm:$0x3] %vm717_vm1, %v234_v19  ;;  %p522_p13 = pnand %p521_p12, %p517_p4 }
  0x37   : > { %525 = shalt.err (!%p522_p13)
}
  0x38   : > { %385 = dma.vmem_to_hbm [thread:$0]  (%p681_p9), %s254_s21, 128, %s256_s18, %s238_s23  }
  0x39 PF: > { %s267_s22 = sand.u32 1, %s564_s9   ;;  %p776_p0 = scmp.ge.s32.totalorder %s584_s14, 2 }
  0x3a   : > { %s268_s5 = scalar_lea.sflag [#allocation4], %s267_s22 }
  0x3b   : > { %p396_p3 = pnand %p776_p0, %p652_p6 }
  0x3d   : > { %p397_p5 = pneg %p396_p3 }
  0x3f   : > { %559 = dma.done.wait (%p397_p5), %s268_s5, 128  }
  0x40   : > { %561 = vsyncadd (%p397_p5), %s268_s5, 4294967168  ;;  %s19_s14 = sadd.s32 1, %s584_s14   ;;  %s777_s9 = smov %s568_s10 }
  0x41   : > { %p16_p7 = scmp.ge.s32.totalorder %s19_s14, 4   ;;  %s778_s10 = smov %s572_s11 }
  0x42   : > { %s779_s11 = smov %s687_s3  ;;  %s780_s12 = smov %s580_s13 }
  0x43   : > { %s781_s13 = smov %s783_s25  ;;  %18 = sbr.rel (!%p16_p7) target bundleno = 7 (0x7), region = 84 }
  0x48   :  { %274 = vsyncpa [#allocation3], 1 }
  0x49   :  { %276 = vsyncpa [#allocation3 + $0x1], 1 }
  0x4a   :  { %277 = vsyncpa [#allocation4], 1 }
  0x4b   :  { %279 = vsyncpa [#allocation4 + $0x1], 1 }
  0x4c   :  { %280 = vsyncpa [#allocation5], 1 }
  0x4d   :  { %282 = vsyncpa [#allocation5 + $0x1], 1 }

</bundles_post_ra>
